<compile_context>
chip_gen: v6e
topology: v6e:2x2x1
jax: 0.10.0
libtpu: 0.0.40
codegen_flags: <defaults>
</compile_context>

<pallas_src>
import functools

import jax
import jax.numpy as jnp
from jax.experimental import pallas as pl
from jax.experimental.pallas import tpu as pltpu


# ---------------------------------------------------------------------------
# Config (mirrors StrategyNetConfig)
# ---------------------------------------------------------------------------
DIM_INFO = 3              # dim_of_information_process  (d')
DIM_ASSET = 2             # dim_of_tradable_asset       (d)
NUM_LAYERS = 2            # number_of_layers            (L)
HIDDEN = 32               # nodes_in_intermediate_layers (H)
D_IN = DIM_INFO + 1       # input layer takes d' + 1 features

D_IN_PAD = 8              # input features padded to one sublane group
OUT_ROWS = 8              # output features padded to one sublane group
LANE = 128                # TPU lane width
DEFAULT_TILE_N = 4096     # rows (MC paths) per grid step; multiple of 256


def _round_up(x, m):
    return ((x + m - 1) // m) * m


# ---------------------------------------------------------------------------
# Pallas kernel: whole MLP hot path for one TILE_N-row block, feature-major.
# Weights are full resident blocks; only x / o advance with the row grid index.
# ---------------------------------------------------------------------------
def _strategy_net_kernel(num_layers,
                         x_ref,       # (D_IN_PAD, TILE_N)   feature-major input
                         w_in_ref,    # (H, D_IN_PAD)        PyTorch (out, in) layout
                         b_in_ref,    # (H, 1)
                         w_mid_ref,   # (num_layers, H, H)
                         b_mid_ref,   # (num_layers, H, 1)
                         w_out_ref,   # (OUT_ROWS, H)        rows >= d are zero
                         b_out_ref,   # (OUT_ROWS, 1)        rows >= d are zero
                         o_ref):      # (OUT_ROWS, TILE_N)   feature-major output
    # input layer: h = W_in @ x + b_in  -> (H, TILE_N), batch on the lane axis
    h = jnp.dot(w_in_ref[...], x_ref[...],
                preferred_element_type=jnp.float32) + b_in_ref[...]

    # intermediate layers: ReLU applied BEFORE each linear, as in StrategyNet.forward
    for i in range(num_layers):
        h = jnp.maximum(h, 0.0)
        h = jnp.dot(w_mid_ref[i], h,
                    preferred_element_type=jnp.float32) + b_mid_ref[i]

    # output activation is Identity, then the output layer (compact lane-dense store)
    out = jnp.dot(w_out_ref[...], h,
                  preferred_element_type=jnp.float32) + b_out_ref[...]
    o_ref[...] = out.astype(o_ref.dtype)


def strategy_net_forward(x, params, *, num_layers=NUM_LAYERS, tile_n=DEFAULT_TILE_N):
    """Batched forward: x is (n, d'+1); returns the strategy of shape (n, d)."""
    n, d_in = x.shape
    assert d_in == D_IN, f"expected {D_IN} input features, got {d_in}"
    assert 1 <= num_layers <= params["w_midT"].shape[0], "num_layers exceeds stored layers"

    # --- row-tile selection ---------------------------------------------------
    tile_cap = _round_up(n, LANE)            # smallest legal tile covering the batch
    if tile_cap <= tile_n:
        # Small batch: prefer two even tiles so v7x's two TensorCores both get work.
        tile_n = tile_cap if tile_cap < 2 * LANE else _round_up(tile_cap // 2, LANE)
    n_pad = _round_up(n, tile_n)
    num_tiles = n_pad // tile_n
    if num_tiles > 1 and num_tiles % 2 == 1:
        # Keep the step count even for the 2-TC split; the extra all-zero tile costs
        # the same wall time as leaving one core idle for the final odd step.
        num_tiles += 1
        n_pad = num_tiles * tile_n

    # --- per-call input prep ----------------------------------------------------
    # Transpose + zero-pad the (n, 4) input into the feature-major (8, n_pad) layout
    # (~16 B/row of extra traffic). Ideally the Monte-Carlo simulation keeps its state
    # feature-major upstream, making this a no-op.
    x_fm = jnp.pad(x.astype(jnp.float32).T,
                   ((0, D_IN_PAD - D_IN), (0, n_pad - n)))

    kernel = functools.partial(_strategy_net_kernel, num_layers)

    def resident(shape):
        # constant index_map -> parameter block is DMA'd once and stays resident
        nd = len(shape)
        return pl.BlockSpec(shape, lambda i: (0,) * nd)

    # Advisory cost estimate so XLA schedules the surrounding pad/slice well.
    flops = 2 * n_pad * (D_IN_PAD * HIDDEN
                         + num_layers * HIDDEN * HIDDEN
                         + HIDDEN * OUT_ROWS)
    param_elems = (HIDDEN * D_IN_PAD + HIDDEN
                   + num_layers * (HIDDEN * HIDDEN + HIDDEN)
                   + OUT_ROWS * HIDDEN + OUT_ROWS)
    bytes_accessed = 4 * (D_IN_PAD * n_pad + OUT_ROWS * n_pad + param_elems)

    out_fm = pl.pallas_call(
        kernel,
        out_shape=jax.ShapeDtypeStruct((OUT_ROWS, n_pad), jnp.float32),
        grid=(num_tiles,),
        in_specs=[
            # activations advance with the row grid (rows on the 128-lane axis)
            pl.BlockSpec((D_IN_PAD, tile_n), lambda i: (0, i)),
            # parameters: resident across all grid steps
            resident((HIDDEN, D_IN_PAD)),
            resident((HIDDEN, 1)),
            resident((num_layers, HIDDEN, HIDDEN)),
            resident((num_layers, HIDDEN, 1)),
            resident((OUT_ROWS, HIDDEN)),
            resident((OUT_ROWS, 1)),
        ],
        out_specs=pl.BlockSpec((OUT_ROWS, tile_n), lambda i: (0, i)),
        compiler_params=pltpu.CompilerParams(
            dimension_semantics=("parallel",),
            vmem_limit_bytes=32 * 1024 * 1024,
        ),
        cost_estimate=pl.CostEstimate(
            flops=flops, transcendentals=0, bytes_accessed=bytes_accessed),
    )(x_fm, params["w_inT"], params["b_inT"],
      params["w_midT"][:num_layers], params["b_midT"][:num_layers],
      params["w_outT"], params["b_outT"])

    # Strip feature / row padding and return the (n, d) strategy.
    return out_fm[:DIM_ASSET, :n].T


# ---------------------------------------------------------------------------
# One-time parameter packing (padding hoisted OUT of the per-call path).
# ---------------------------------------------------------------------------
def pack_params(w_in, b_in, w_mid, b_mid, w_out, b_out):
    """Pack PyTorch-layout params (weights (out,in), biases (out,)) into the kernel's
    feature-major, zero-padded layout. Call once (e.g. after each optimizer step)."""
    L = w_mid.shape[0]
    return {
        "w_inT":  jnp.pad(w_in.astype(jnp.float32), ((0, 0), (0, D_IN_PAD - D_IN))),
        "b_inT":  b_in.astype(jnp.float32).reshape(HIDDEN, 1),
        "w_midT": w_mid.astype(jnp.float32),
        "b_midT": b_mid.astype(jnp.float32).reshape(L, HIDDEN, 1),
        # padded output rows / bias kept exactly zero so padding can never leak
        "w_outT": jnp.pad(w_out.astype(jnp.float32),
                          ((0, OUT_ROWS - DIM_ASSET), (0, 0))),
        "b_outT": jnp.pad(b_out.astype(jnp.float32).reshape(DIM_ASSET, 1),
                          ((0, OUT_ROWS - DIM_ASSET), (0, 0))),
    }


def init_params(key):
    """PyTorch nn.Linear default init: U(-1/sqrt(fan_in), +1/sqrt(fan_in))."""
    ks = jax.random.split(key, 6)

    def uniform(k, shape, fan_in):
        bound = 1.0 / jnp.sqrt(jnp.float32(fan_in))
        return jax.random.uniform(k, shape, jnp.float32, -bound, bound)

    return pack_params(
        uniform(ks[0], (HIDDEN, D_IN), D_IN),
        uniform(ks[1], (HIDDEN,), D_IN),
        uniform(ks[2], (NUM_LAYERS, HIDDEN, HIDDEN), HIDDEN),
        uniform(ks[3], (NUM_LAYERS, HIDDEN), HIDDEN),
        uniform(ks[4], (DIM_ASSET, HIDDEN), HIDDEN),
        uniform(ks[5], (DIM_ASSET,), HIDDEN),
    )


# ---------------------------------------------------------------------------
# Pure-JAX reference for a correctness check (same packed params).
# ---------------------------------------------------------------------------
def strategy_net_ref(x, params, num_layers=NUM_LAYERS):
    h = x @ params["w_inT"][:, :D_IN].T + params["b_inT"][:, 0]
    for i in range(num_layers):
        h = jnp.maximum(h, 0.0)
        h = h @ params["w_midT"][i].T + params["b_midT"][i, :, 0]
    return h @ params["w_outT"][:DIM_ASSET].T + params["b_outT"][:DIM_ASSET, 0]


if __name__ == "__main__":
    key = jax.random.PRNGKey(0)
    k_x, k_p = jax.random.split(key)

    # Monte-Carlo paths folded into the batch dimension; small demo shape.
    # (512 rows -> two 256-row tiles so both v7x TensorCores are exercised.)
    batch = 512
    x = jax.random.normal(k_x, (batch, D_IN), dtype=jnp.float32)
    params = init_params(k_p)

    out = strategy_net_forward(x, params)
    out = jax.block_until_ready(out)

    ref = strategy_net_ref(x, params)
    assert out.shape == (batch, DIM_ASSET)
    assert jnp.allclose(out, ref, atol=1e-5, rtol=1e-5), "mismatch vs JAX reference"

    print("KERNEL_OK")
</pallas_src>

<mosaic_0001>
module attributes {stable_mosaic.version = 11 : i64} {
  func.func @_strategy_net_kernel(%arg0: i32, %arg1: memref<8x256xf32, #tpu.memory_space<vmem>>, %arg2: memref<32x8xf32, #tpu.memory_space<vmem>>, %arg3: memref<32x1xf32, #tpu.memory_space<vmem>>, %arg4: memref<2x32x32xf32, #tpu.memory_space<vmem>>, %arg5: memref<2x32x1xf32, #tpu.memory_space<vmem>>, %arg6: memref<8x32xf32, #tpu.memory_space<vmem>>, %arg7: memref<8x1xf32, #tpu.memory_space<vmem>>, %arg8: memref<8x256xf32, #tpu.memory_space<vmem>>) attributes {dimension_semantics = [#tpu.dimension_semantics<parallel>], iteration_bounds = array<i64: 2>, scalar_prefetch = 0 : i64, scratch_operands = 0 : i64, tpu.core_type = #tpu.core_type<tc>, window_params = [{transform_indices = @transform_0, window_bounds = array<i64: 8, 256>}, {pipeline_mode = #tpu.pipeline_mode<synchronous>, transform_indices = @transform_1, window_bounds = array<i64: 32, 8>}, {pipeline_mode = #tpu.pipeline_mode<synchronous>, transform_indices = @transform_2, window_bounds = array<i64: 32, 1>}, {pipeline_mode = #tpu.pipeline_mode<synchronous>, transform_indices = @transform_3, window_bounds = array<i64: 2, 32, 32>}, {pipeline_mode = #tpu.pipeline_mode<synchronous>, transform_indices = @transform_4, window_bounds = array<i64: 2, 32, 1>}, {pipeline_mode = #tpu.pipeline_mode<synchronous>, transform_indices = @transform_5, window_bounds = array<i64: 8, 32>}, {pipeline_mode = #tpu.pipeline_mode<synchronous>, transform_indices = @transform_6, window_bounds = array<i64: 8, 1>}, {transform_indices = @transform_7, window_bounds = array<i64: 8, 256>}]} {
    %c0 = arith.constant 0 : index
    %c0_0 = arith.constant 0 : index
    %0 = vector.load %arg2[%c0, %c0_0] : memref<32x8xf32, #tpu.memory_space<vmem>>, vector<32x8xf32>
    %c0_1 = arith.constant 0 : index
    %c0_2 = arith.constant 0 : index
    %1 = vector.load %arg1[%c0_1, %c0_2] : memref<8x256xf32, #tpu.memory_space<vmem>>, vector<8x256xf32>
    %cst = arith.constant dense<0.000000e+00> : vector<32x256xf32>
    %2 = tpu.matmul %0, %1, %cst {dimension_numbers = #tpu.dot_dimension_numbers<[1], [0], [0], [1], [0, 0, 1, 1], [], []>} : vector<32x8xf32>, vector<8x256xf32>, vector<32x256xf32> -> vector<32x256xf32>
    %c0_3 = arith.constant 0 : index
    %c0_4 = arith.constant 0 : index
    %3 = vector.load %arg3[%c0_3, %c0_4] : memref<32x1xf32, #tpu.memory_space<vmem>>, vector<32x1xf32>
    %4 = vector.broadcast %3 : vector<32x1xf32> to vector<32x256xf32>
    %5 = arith.addf %2, %4 : vector<32x256xf32>
    %cst_5 = arith.constant 0.000000e+00 : f32
    %6 = vector.broadcast %cst_5 : f32 to vector<32x256xf32>
    %7 = arith.maximumf %5, %6 : vector<32x256xf32>
    %c0_6 = arith.constant 0 : index
    %c0_7 = arith.constant 0 : index
    %c0_8 = arith.constant 0 : index
    %8 = vector.load %arg4[%c0_6, %c0_7, %c0_8] : memref<2x32x32xf32, #tpu.memory_space<vmem>>, vector<1x32x32xf32>
    %9 = vector.shape_cast %8 : vector<1x32x32xf32> to vector<32x32xf32>
    %cst_9 = arith.constant dense<0.000000e+00> : vector<32x256xf32>
    %10 = tpu.matmul %9, %7, %cst_9 {dimension_numbers = #tpu.dot_dimension_numbers<[1], [0], [0], [1], [0, 0, 1, 1], [], []>} : vector<32x32xf32>, vector<32x256xf32>, vector<32x256xf32> -> vector<32x256xf32>
    %c0_10 = arith.constant 0 : index
    %c0_11 = arith.constant 0 : index
    %c0_12 = arith.constant 0 : index
    %11 = vector.load %arg5[%c0_10, %c0_11, %c0_12] : memref<2x32x1xf32, #tpu.memory_space<vmem>>, vector<1x32x1xf32>
    %12 = vector.shape_cast %11 : vector<1x32x1xf32> to vector<32x1xf32>
    %13 = vector.broadcast %12 : vector<32x1xf32> to vector<32x256xf32>
    %14 = arith.addf %10, %13 : vector<32x256xf32>
    %cst_13 = arith.constant 0.000000e+00 : f32
    %15 = vector.broadcast %cst_13 : f32 to vector<32x256xf32>
    %16 = arith.maximumf %14, %15 : vector<32x256xf32>
    %c1 = arith.constant 1 : index
    %c0_14 = arith.constant 0 : index
    %c0_15 = arith.constant 0 : index
    %17 = vector.load %arg4[%c1, %c0_14, %c0_15] : memref<2x32x32xf32, #tpu.memory_space<vmem>>, vector<1x32x32xf32>
    %18 = vector.shape_cast %17 : vector<1x32x32xf32> to vector<32x32xf32>
    %cst_16 = arith.constant dense<0.000000e+00> : vector<32x256xf32>
    %19 = tpu.matmul %18, %16, %cst_16 {dimension_numbers = #tpu.dot_dimension_numbers<[1], [0], [0], [1], [0, 0, 1, 1], [], []>} : vector<32x32xf32>, vector<32x256xf32>, vector<32x256xf32> -> vector<32x256xf32>
    %c1_17 = arith.constant 1 : index
    %c0_18 = arith.constant 0 : index
    %c0_19 = arith.constant 0 : index
    %20 = vector.load %arg5[%c1_17, %c0_18, %c0_19] : memref<2x32x1xf32, #tpu.memory_space<vmem>>, vector<1x32x1xf32>
    %21 = vector.shape_cast %20 : vector<1x32x1xf32> to vector<32x1xf32>
    %22 = vector.broadcast %21 : vector<32x1xf32> to vector<32x256xf32>
    %23 = arith.addf %19, %22 : vector<32x256xf32>
    %c0_20 = arith.constant 0 : index
    %c0_21 = arith.constant 0 : index
    %24 = vector.load %arg6[%c0_20, %c0_21] : memref<8x32xf32, #tpu.memory_space<vmem>>, vector<8x32xf32>
    %cst_22 = arith.constant dense<0.000000e+00> : vector<8x256xf32>
    %25 = tpu.matmul %24, %23, %cst_22 {dimension_numbers = #tpu.dot_dimension_numbers<[1], [0], [0], [1], [0, 0, 1, 1], [], []>} : vector<8x32xf32>, vector<32x256xf32>, vector<8x256xf32> -> vector<8x256xf32>
    %c0_23 = arith.constant 0 : index
    %c0_24 = arith.constant 0 : index
    %26 = vector.load %arg7[%c0_23, %c0_24] : memref<8x1xf32, #tpu.memory_space<vmem>>, vector<8x1xf32>
    %27 = vector.broadcast %26 : vector<8x1xf32> to vector<8x256xf32>
    %28 = arith.addf %25, %27 : vector<8x256xf32>
    %c0_25 = arith.constant 0 : index
    %c0_26 = arith.constant 0 : index
    %29 = vector.load %arg8[%c0_25, %c0_26] : memref<8x256xf32, #tpu.memory_space<vmem>>, vector<8x256xf32>
    tpu.vector_store %arg8[%c0_25, %c0_26], %28 {strides = array<i32>} : memref<8x256xf32, #tpu.memory_space<vmem>>, vector<8x256xf32>,
    return
  }
  func.func @transform_0(%arg0: i32) -> (i32, i32) {
    %c0_i32 = arith.constant 0 : i32
    %c0_i32_0 = arith.constant 0 : i32
    return %c0_i32, %arg0 : i32, i32
  }
  func.func @transform_1(%arg0: i32) -> (i32, i32) {
    %c0_i32 = arith.constant 0 : i32
    %c0_i32_0 = arith.constant 0 : i32
    %c0_i32_1 = arith.constant 0 : i32
    return %c0_i32, %c0_i32_0 : i32, i32
  }
  func.func @transform_2(%arg0: i32) -> (i32, i32) {
    %c0_i32 = arith.constant 0 : i32
    %c0_i32_0 = arith.constant 0 : i32
    %c0_i32_1 = arith.constant 0 : i32
    return %c0_i32, %c0_i32_0 : i32, i32
  }
  func.func @transform_3(%arg0: i32) -> (i32, i32, i32) {
    %c0_i32 = arith.constant 0 : i32
    %c0_i32_0 = arith.constant 0 : i32
    %c0_i32_1 = arith.constant 0 : i32
    %c0_i32_2 = arith.constant 0 : i32
    return %c0_i32, %c0_i32_0, %c0_i32_1 : i32, i32, i32
  }
  func.func @transform_4(%arg0: i32) -> (i32, i32, i32) {
    %c0_i32 = arith.constant 0 : i32
    %c0_i32_0 = arith.constant 0 : i32
    %c0_i32_1 = arith.constant 0 : i32
    %c0_i32_2 = arith.constant 0 : i32
    return %c0_i32, %c0_i32_0, %c0_i32_1 : i32, i32, i32
  }
  func.func @transform_5(%arg0: i32) -> (i32, i32) {
    %c0_i32 = arith.constant 0 : i32
    %c0_i32_0 = arith.constant 0 : i32
    %c0_i32_1 = arith.constant 0 : i32
    return %c0_i32, %c0_i32_0 : i32, i32
  }
  func.func @transform_6(%arg0: i32) -> (i32, i32) {
    %c0_i32 = arith.constant 0 : i32
    %c0_i32_0 = arith.constant 0 : i32
    %c0_i32_1 = arith.constant 0 : i32
    return %c0_i32, %c0_i32_0 : i32, i32
  }
  func.func @transform_7(%arg0: i32) -> (i32, i32) {
    %c0_i32 = arith.constant 0 : i32
    %c0_i32_0 = arith.constant 0 : i32
    return %c0_i32, %arg0 : i32, i32
  }
}

</mosaic_0001>

<bundles_post_ra>
// kernel: tpu_custom_call.1
= control target key start
LH: loop header
LB: loop body
LE: loop exit
PB: predicated region body
PF: predicated region fallthrough
CT: control target
= control target key end

     0   :  { %12 = vsyncpa [#allocation3], 0  ;;  %s1220_s0 = inlined_call_operand.vmem [shape: f32[8,512], index: 0, kind: input, shape index: {}]   ;;  %s1221_s1 = inlined_call_operand.vmem [shape: f32[32,8], index: 1, kind: input, shape index: {}]   ;;  %s1222_s2 = inlined_call_operand.vmem [shape: f32[32,1], index: 2, kind: input, shape index: {}]   ;;  %s1223_s3 = inlined_call_operand.vmem [shape: f32[2,32,32], index: 3, kind: input, shape index: {}]   ;;  %s1224_s4 = inlined_call_operand.vmem [shape: f32[2,32,1], index: 4, kind: input, shape index: {}]   ;;  %s1225_s5 = inlined_call_operand.vmem [shape: f32[8,32], index: 5, kind: input, shape index: {}]   ;;  %s1226_s6 = inlined_call_operand.vmem [shape: f32[8,1], index: 6, kind: input, shape index: {}]   ;;  %s1227_s7 = inlined_call_operand.hbm [shape: f32[8,512], index: 7, kind: output, shape index: {}]  }
   0x1   :  { %14 = vsyncpa [#allocation3 + $0x1], 0  ;;  %s1030_s24 = smov 0   ;;  %s1032_s25 = smov 0  }
   0x2   :  { %s1034_s26 = smov 0   ;;  %s1036_s27 = smov 0  }
   0x3 LB: > { %s1051_s28 = sadd.s32 4294967295, %s985_s27   ;;  %s846_s29 = sadd.s32 4294967294, %s985_s27   ;;  %s985_s27 = sphi %s1036_s27, %s1233_s27   ;;  %s981_s26 = sphi %s1034_s26, %s1232_s26   ;;  %s977_s25 = sphi %s1032_s25, %s1231_s25   ;;  %s973_s24 = sphi %s1030_s24, %s1230_s24  }
   0x4   : > { %s1055_s30 = sadd.s32 1, %s985_s27   ;;  %s179_s8 = sadd.s32 1, %s981_s26 }
   0x5   : > { %s176_s9 = ssub.s32 %s985_s27, %s1055_s30  ;;  %p189_p0 = scmp.ne.s32.totalorder %s981_s26, %s977_s25 }
   0x6   : > { %p177_p1 = scmp.eq.s32.totalorder %s176_s9, 0  ;;  %p190_p2 = scmp.eq.s32.totalorder %s1051_s28, 1 }
   0x7   : > { %p195_p3 = scmp.ne.s32.totalorder %s977_s25, %s973_s24  ;;  %p196_p4 = scmp.eq.s32.totalorder %s846_s29, 1 }
   0x8   : > { %s1066_s10 = scalar_select %p177_p1, %s981_s26, %s179_s8  }
   0x9   : > { %p1068_p5 = por %p190_p2, %p189_p0  ;;  %p1072_p6 = por %p196_p4, %p195_p3 }
   0xa   : > { %p849_p7 = scmp.ge.s32.totalorder %s985_s27, 1  ;;  %p241_p8 = scmp.lt.s32.totalorder %s985_s27, 3 }
   0xc   : > { %p242_p9 = pnand %p849_p7, %p241_p8 }
   0xd   : > { %s851_s13 = sshll.u32 (!%p242_p9), %s1051_s28, 1  ;;  %s270_s15 = sand.u32 (!%p242_p9), 1, %s977_s25  }
   0xe   : > { %245 = sbr.rel (%p242_p9) target bundleno = 882 (0x372), region = 48  ;;  %p274_p10 = scmp.lt.s32.totalorder (!%p242_p9), %s851_s13, 3 }
   0xf   : > { %s850_s16 = sshll.u32 (!%p242_p9), %s270_s15, 4  ;;  %s989_s29 = smov (!%p242_p9), [#allocation2]  }
  0x10   : > { %s272_s17 = scalar_lea.vmem (!%p242_p9), [#allocation2], %s850_s16 }
  0x11   : > { %s787_s18 = sshll.u32 (!%p242_p9), %s272_s17, 4  ;;  %s788_s18 = int_to_ptr.vmem [resolvable:$true] %s787_s18 }
  0x12   : > { %s925_s23 = scalar_lea.vmem (!%p242_p9), %s788_s18, 256 }
  0x13   : > { %v987_v0 = vmov 0.0   ;;  %v289_v1 = vld [vmem:[%s1222_s2 + $0x18] sm:$0xff]  ;;  %v988_v2 = vmov 0   ;;  %v287_v3 = vld [vmem:[%s1222_s2 + $0x8] sm:$0xff]  ;;  %s1235_s13 = smov (!%p274_p10, %s851_s13), 3  ;;  %v288_v4 = vld [vmem:[%s1222_s2 + $0x10] sm:$0xff]  ;;  %p926_p11 = scmp.ne.s32.totalorder %s788_s18, %s925_s23 }
  0x14   : > { %399 = vmatprep.mubr.f32.mxu1 %v987_v0  ;;  %387 = vmatprep.mubr.f32.mxu0 %v987_v0  ;;  %v286_v5 = vld [vmem:[%s1222_s2] sm:$0xff]  ;;  %s852_s22 = sshll.u32 %s1235_s13, 3  ;;  %v282_v6 = vld [vmem:[%s1221_s1 + $0x10] sm:$0xff]  ;;  %vm310_vm0 = vcmask 64512   ;;  %v427_v10 = vld [vmem:[%s1224_s4 + $0x18] sm:$0xff]  ;;  %vm448_vm1 = vcmask 261120  }
  0x15   : > { %923 = vset.pattern.permute.xlu0 %v988_v2  ;;  %924 = vset.pattern.permute.xlu1 %v988_v2  ;;  %s277_s8 = scalar_lea.vmem %s1220_s0, %s852_s22  ;;  %v280_v9 = vld [vmem:[%s1221_s1] sm:$0xff]  ;;  %v426_v11 = vld [vmem:[%s1224_s4 + $0x10] sm:$0xff]  ;;  %v283_v12 = vld [vmem:[%s1221_s1 + $0x18] sm:$0xff]  ;;  %s879_s13 = sshll.u32 %s1051_s28, 8 }
  0x16   : > { %307 = vperm.xlu0 %923, %v289_v1   ;;  %297 = vperm.xlu1 %924, %v287_v3   ;;  %v285_v7 = vld [vmem:[%s277_s8 + $0x8] sm:$0xff]  ;;  %v284_v8 = vld [vmem:[%s277_s8] sm:$0xff]  ;;  %v868_v16 = vld [vmem:[%s1224_s4 + $0x38] sm:$0xff]  ;;  %s785_s21 = scalar_lea.hbm %s1227_s7, %s879_s13  ;;  %s773_s22 = scalar_lea.sflag [#allocation3], %s270_s15 }
  0x17   : > { %880 = vmatprep.subr.mxu1 %v285_v7  ;;  %353 = vmatprep.subr.mxu0 %v285_v7  ;;  %v281_v13 = vld [vmem:[%s1221_s1 + $0x8] sm:$0xff]  ;;  %v424_v15 = vld [vmem:[%s1224_s4] sm:$0xff]  ;;  %v867_v17 = vld [vmem:[%s1224_s4 + $0x30] sm:$0xff]  ;;  %p927_p12 = pnand %p926_p11, %p1068_p5  ;;  %s929_s28 = sshll.u32 %s989_s29, 4  ;;  %s930_s28 = int_to_ptr.vmem [resolvable:$false] %s929_s28 }
  0x18   : > { %881 = vmatpush1.msra.mxu1 %v284_v8  ;;  %354 = vmatpush1.msra.mxu0 %v284_v8  ;;  %v425_v14 = vld [vmem:[%s1224_s4 + $0x8] sm:$0xff]  ;;  %v865_v19 = vld [vmem:[%s1224_s4 + $0x20] sm:$0xff]  ;;  %v422_v51 = vld [vmem:[%s1223_s3 + $0x10] sm:$0xff]  ;;  %s931_s8 = scalar_lea.vmem %s930_s28, 512  ;;  %p932_p0 = scmp.lt.s32.totalorder %s788_s18, %s930_s28 }
  0x19   : > { %855 = vmatmul.mubr.msk.f32.vlgmr.msra.gmra.mxu1 %vm310_vm0, %v282_v6  ;;  %853 = vmatmul.mubr.msk.f32.vlgmr.msra.gmra.mxu0 %vm310_vm0, %v280_v9  ;;  %v866_v18 = vld [vmem:[%s1224_s4 + $0x28] sm:$0xff]  ;;  %v690_v20 = vld [vmem:[%s1226_s6] sm:$0xff]  ;;  %v423_v52 = vld [vmem:[%s1223_s3 + $0x18] sm:$0xff]  ;;  %p928_p13 = pneg %p927_p12  ;;  %p933_p1 = scmp.lt.s32.totalorder %s931_s8, %s925_s23 }
  0x1a   : > { %302 = vperm.xlu0 %923, %v288_v4   ;;  %292 = vperm.xlu1 %924, %v286_v5   ;;  %v420_v49 = vld [vmem:[%s1223_s3] sm:$0xff]  ;;  %v421_v50 = vld [vmem:[%s1223_s3 + $0x8] sm:$0xff] }
  0x1b   : > { %405 = vmatprep.mubr.f32.mxu1 %v987_v0  ;;  %393 = vmatprep.mubr.f32.mxu0 %v987_v0  ;;  %p934_p2 = por %p933_p1, %p932_p0 }
  0x1d   : > { %856 = vmatmul.mubr.msk.f32.gmra.mxu1 %vm310_vm0, %v283_v12  ;;  %854 = vmatmul.mubr.msk.f32.gmra.mxu0 %vm310_vm0, %v281_v13  ;;  %p935_p3 = pnand %p934_p2, %p928_p13 }
  0x1e   : > { %445 = vperm.xlu0 %923, %v427_v10   ;;  %440 = vperm.xlu1 %924, %v426_v11  }
  0x1f   : > { %525 = vmatprep.mubr.f32.mxu1 %v987_v0  ;;  %664 = vmatprep.mubr.f32.mxu0 %v987_v0 }
  0x22   : > { %435 = vperm.xlu0 %923, %v425_v14   ;;  %430 = vperm.xlu1 %924, %v424_v15  }
  0x26   : > { %585 = vperm.xlu0 %923, %v868_v16   ;;  %580 = vperm.xlu1 %924, %v867_v17  }
  0x2a   : > { %575 = vperm.xlu0 %923, %v866_v18   ;;  %570 = vperm.xlu1 %924, %v865_v19   ;;  %v861_v18 = vld [vmem:[%s1223_s3 + $0x20] sm:$0xff]  ;;  %v862_v19 = vld [vmem:[%s1223_s3 + $0x28] sm:$0xff] }
  0x2e   : > { %693 = vperm.xlu0 %923, %v690_v20   ;;  %v863_v20 = vld [vmem:[%s1223_s3 + $0x30] sm:$0xff] }
  0x91   : > { %v308_v21 = vpop.permute.xlu0 %307  ;;  %v298_v26 = vpop.permute.xlu1 %297 }
  0x95   : > { %v303_v29 = vpop.permute.xlu0 %302  ;;  %v293_v38 = vpop.permute.xlu1 %292 }
  0x99   : > { %v446_v58 = vpop.permute.xlu0 %445  ;;  %v441_v60 = vpop.permute.xlu1 %440 }
  0x9d   : > { %v436_v3 = vpop.permute.xlu0 %435  ;;  %v431_v7 = vpop.permute.xlu1 %430 }
  0xd9   : > { %v401_v22 = vpop.f32.mrf.mxu1  ;;  %v389_v23 = vpop.f32.mrf.mxu0 }
  0xda   : > { %v402_v35 = vadd.f32 %v401_v22, %v303_v29  ;;  %v390_v44 = vadd.f32 %v389_v23, %v293_v38 }
  0xdb   : > { %v403_v24 = vpop.f32.mrf.mxu1  ;;  %v391_v25 = vpop.f32.mrf.mxu0 }
  0xdc   : > { %v404_v33 = vadd.f32 %v403_v24, %v303_v29  ;;  %v392_v42 = vadd.f32 %v391_v25, %v293_v38  ;;  %v416_v43 = vmax.f32 %v402_v35, 0.0  ;;  %v412_v48 = vmax.f32 %v390_v44, 0.0 }
  0xdd   : > { %v407_v27 = vpop.f32.mrf.mxu1  ;;  %v395_v28 = vpop.f32.mrf.mxu0 }
  0xde   : > { %v408_v30 = vadd.f32 %v407_v27, %v308_v21  ;;  %v396_v40 = vadd.f32 %v395_v28, %v298_v26  ;;  %v417_v41 = vmax.f32 %v404_v33, 0.0  ;;  %v413_v47 = vmax.f32 %v392_v42, 0.0  ;;  %v586_v28 = vpop.permute.xlu0 %585 }
  0xdf   : > { %v409_v31 = vpop.f32.mrf.mxu1  ;;  %v397_v32 = vpop.f32.mrf.mxu0 }
  0xe0   : > { %v410_v34 = vadd.f32 %v409_v31, %v308_v21  ;;  %v398_v37 = vadd.f32 %v397_v32, %v298_v26  ;;  %v418_v39 = vmax.f32 %v408_v30, 0.0  ;;  %v414_v46 = vmax.f32 %v396_v40, 0.0  ;;  %v864_v21 = vld [vmem:[%s1223_s3 + $0x38] sm:$0xff]  ;;  %v581_v30 = vpop.permute.xlu1 %580 }
  0xe2   : > { %v419_v36 = vmax.f32 %v410_v34, 0.0  ;;  %v415_v45 = vmax.f32 %v398_v37, 0.0 }
  0xe4   : > { %485 = vmatprep.subr.mxu1 %v419_v36  ;;  %v571_v37 = vpop.permute.xlu1 %570 }
  0xe5   : > { %486 = vmatpush1.msra.mxu1 %v418_v39 }
  0xe6   : > { %487 = vmatprep.subr.mxu1 %v417_v41  ;;  %v689_v41 = vld [vmem:[%s1225_s5] sm:$0xff] }
  0xe7   : > { %488 = vmatpush1.msra.mxu1 %v416_v43 }
  0xe8   : > { %489 = vmatprep.subr.mxu1 %v415_v45 }
  0xe9   : > { %490 = vmatpush1.msra.mxu1 %v414_v46 }
  0xea   : > { %491 = vmatprep.subr.mxu1 %v413_v47 }
  0xeb   : > { %492 = vmatpush1.msra.mxu1 %v412_v48 }
  0xec   : > { %857 = vmatmul.mubr.msk.f32.vlgmr.msra.gmra.mxu1 %vm448_vm1, %v420_v49 }
  0xed   : > { %531 = vmatprep.mubr.f32.mxu1 %v987_v0 }
  0xf0   : > { %858 = vmatmul.mubr.msk.f32.gmra.mxu1 %vm448_vm1, %v421_v50 }
  0xf1   : > { %537 = vmatprep.mubr.f32.mxu1 %v987_v0 }
  0xf4   : > { %859 = vmatmul.mubr.msk.f32.gmra.mxu1 %vm448_vm1, %v422_v51 }
  0xf5   : > { %543 = vmatprep.mubr.f32.mxu1 %v987_v0 }
  0xf8   : > { %860 = vmatmul.mubr.msk.f32.gmra.mxu1 %vm448_vm1, %v423_v52 }
  0xf9   : > { %763 = vmatprep.mubr.f32.mxu1 %v987_v0 }
 0x1ac   : > { %v527_v53 = vpop.f32.mrf.mxu1 }
 0x1ad   : > { %v528_v12 = vadd.f32 %v527_v53, %v431_v7 }
 0x1ae   : > { %v529_v54 = vpop.f32.mrf.mxu1 }
 0x1af   : > { %v530_v10 = vadd.f32 %v529_v54, %v431_v7  ;;  %v550_v17 = vmax.f32 %v528_v12, 0.0 }
 0x1b0   : > { %v533_v55 = vpop.f32.mrf.mxu1 }
 0x1b1   : > { %v534_v8 = vadd.f32 %v533_v55, %v436_v3  ;;  %v551_v16 = vmax.f32 %v530_v10, 0.0 }
 0x1b2   : > { %v535_v56 = vpop.f32.mrf.mxu1 }
 0x1b3   : > { %v536_v5 = vadd.f32 %v535_v56, %v436_v3  ;;  %v552_v15 = vmax.f32 %v534_v8, 0.0 }
 0x1b4   : > { %v539_v57 = vpop.f32.mrf.mxu1 }
 0x1b5   : > { %v540_v4 = vadd.f32 %v539_v57, %v441_v60  ;;  %v553_v14 = vmax.f32 %v536_v5, 0.0 }
 0x1b6   : > { %v541_v59 = vpop.f32.mrf.mxu1 }
 0x1b7   : > { %v542_v1 = vadd.f32 %v541_v59, %v441_v60  ;;  %v554_v13 = vmax.f32 %v540_v4, 0.0 }
 0x1b8   : > { %v545_v61 = vpop.f32.mrf.mxu1 }
 0x1b9   : > { %v546_v62 = vadd.f32 %v545_v61, %v446_v58  ;;  %v555_v11 = vmax.f32 %v542_v1, 0.0 }
 0x1ba   : > { %v547_v63 = vpop.f32.mrf.mxu1 }
 0x1bb   : > { %v548_v2 = vadd.f32 %v547_v63, %v446_v58  ;;  %v556_v9 = vmax.f32 %v546_v62, 0.0 }
 0x1bd   : > { %v557_v6 = vmax.f32 %v548_v2, 0.0 }
 0x1bf   : > { %624 = vmatprep.subr.mxu0 %v557_v6 }
 0x1c0   : > { %625 = vmatpush1.msra.mxu0 %v556_v9 }
 0x1c1   : > { %626 = vmatprep.subr.mxu0 %v555_v11 }
 0x1c2   : > { %627 = vmatpush1.msra.mxu0 %v554_v13 }
 0x1c3   : > { %628 = vmatprep.subr.mxu0 %v553_v14 }
 0x1c4   : > { %629 = vmatpush1.msra.mxu0 %v552_v15 }
 0x1c5   : > { %630 = vmatprep.subr.mxu0 %v551_v16 }
 0x1c6   : > { %631 = vmatpush1.msra.mxu0 %v550_v17 }
 0x1c7   : > { %869 = vmatmul.mubr.msk.f32.vlgmr.msra.gmra.mxu0 %vm448_vm1, %v861_v18 }
 0x1c8   : > { %670 = vmatprep.mubr.f32.mxu0 %v987_v0 }
 0x1cb   : > { %870 = vmatmul.mubr.msk.f32.gmra.mxu0 %vm448_vm1, %v862_v19 }
 0x1cc   : > { %676 = vmatprep.mubr.f32.mxu0 %v987_v0 }
 0x1cf   : > { %871 = vmatmul.mubr.msk.f32.gmra.mxu0 %vm448_vm1, %v863_v20 }
 0x1d0   : > { %682 = vmatprep.mubr.f32.mxu0 %v987_v0  ;;  %v576_v0 = vpop.permute.xlu0 %575 }
 0x1d3   : > { %872 = vmatmul.mubr.msk.f32.gmra.mxu0 %vm448_vm1, %v864_v21 }
 0x1d4   : > { %v694_v42 = vpop.permute.xlu0 %693 }
 0x287   : > { %v666_v22 = vpop.f32.mrf.mxu0 }
 0x288   : > { %v667_v40 = vadd.f32 %v666_v22, %v571_v37 }
 0x289   : > { %v668_v23 = vpop.f32.mrf.mxu0 }
 0x28a   : > { %v669_v39 = vadd.f32 %v668_v23, %v571_v37 }
 0x28b   : > { %v672_v24 = vpop.f32.mrf.mxu0 }
 0x28c   : > { %v673_v38 = vadd.f32 %v672_v24, %v576_v0 }
 0x28d   : > { %v674_v25 = vpop.f32.mrf.mxu0 }
 0x28e   : > { %v675_v36 = vadd.f32 %v674_v25, %v576_v0 }
 0x28f   : > { %v678_v26 = vpop.f32.mrf.mxu0 }
 0x290   : > { %v679_v35 = vadd.f32 %v678_v26, %v581_v30 }
 0x291   : > { %v680_v27 = vpop.f32.mrf.mxu0 }
 0x292   : > { %v681_v34 = vadd.f32 %v680_v27, %v581_v30 }
 0x293   : > { %v684_v29 = vpop.f32.mrf.mxu0 }
 0x294   : > { %v685_v33 = vadd.f32 %v684_v29, %v586_v28 }
 0x295   : > { %v686_v31 = vpop.f32.mrf.mxu0 }
 0x296   : > { %v687_v32 = vadd.f32 %v686_v31, %v586_v28 }
 0x298   : > { %723 = vmatprep.subr.mxu1 %v687_v32 }
 0x299   : > { %724 = vmatpush1.msra.mxu1 %v685_v33 }
 0x29a   : > { %725 = vmatprep.subr.mxu1 %v681_v34 }
 0x29b   : > { %726 = vmatpush1.msra.mxu1 %v679_v35 }
 0x29c   : > { %727 = vmatprep.subr.mxu1 %v675_v36 }
 0x29d   : > { %728 = vmatpush1.msra.mxu1 %v673_v38 }
 0x29e   : > { %729 = vmatprep.subr.mxu1 %v669_v39 }
 0x29f   : > { %730 = vmatpush1.msra.mxu1 %v667_v40 }
 0x2a0   : > { %873 = vmatmul.mubr.msk.f32.vlgmr.msra.gmra.mxu1 %vm448_vm1, %v689_v41 }
 0x360   : > { %v765_v43 = vpop.f32.mrf.mxu1 }
 0x361   : > { %v766_v44 = vadd.f32 %v765_v43, %v694_v42 }
 0x362   : > { %v767_v45 = vpop.f32.mrf.mxu1 }
 0x363   : > { %770 = vst [vmem:[%s272_s17] sm:$0xff] %v766_v44  ;;  %v768_v46 = vadd.f32 %v767_v45, %v694_v42 }
 0x365   : > { %771 = vst [vmem:[%s272_s17 + $0x8] sm:$0xff] %v768_v46 }
 0x366   : > { %938 = shalt.err (!%p935_p3)
}
 0x367   : > { %s939_s9 = scalar_lea.hbm %s785_s21, 256  ;;  %s943_s16 = scalar_lea.hbm %s1227_s7, 512 }
 0x368   : > { %p940_p4 = scmp.ne.s32.totalorder %s785_s21, %s939_s9  ;;  %p944_p9 = scmp.lt.s32.totalorder %s785_s21, %s1227_s7 }
 0x369   : > { %p945_p10 = scmp.lt.s32.totalorder %s943_s16, %s939_s9 }
 0x36a   : > { %p941_p7 = pnand %p940_p4, %p1068_p5 }
 0x36b   : > { %p946_p11 = por %p945_p10, %p944_p9 }
 0x36c   : > { %p942_p8 = pneg %p941_p7 }
 0x36e   : > { %p947_p12 = pnand %p946_p11, %p942_p8 }
 0x370   : > { %950 = shalt.err (!%p947_p12)
}
 0x371   : > { %882 = dma.vmem_to_hbm [thread:$0]  (%p1068_p5), %s788_s18, 256, %s785_s21, %s773_s22  }
 0x372 PF: > { %p888_p13 = scmp.ge.s32.totalorder %s985_s27, 2  ;;  %s799_s19 = sand.u32 1, %s973_s24  }
 0x373   : > { %s800_s20 = scalar_lea.sflag [#allocation3], %s799_s19 }
 0x374   : > { %p885_p0 = pnand %p888_p13, %p1072_p6 }
 0x376   : > { %p886_p1 = pneg %p885_p0 }
 0x378   : > { %968 = dma.done.wait (%p886_p1), %s800_s20, 256  }
 0x379   : > { %970 = vsyncadd (%p886_p1), %s800_s20, 4294967040  ;;  %p17_p2 = scmp.ge.s32.totalorder %s1055_s30, 4   ;;  %s1230_s24 = smov %s977_s25 }
 0x37a   : > { %s1231_s25 = smov %s981_s26  ;;  %s1232_s26 = smov %s1066_s10 }
 0x37b   : > { %s1233_s27 = smov %s1055_s30  ;;  %19 = sbr.rel (!%p17_p2) target bundleno = 3 (0x3), region = 85 }
 0x380   :  { %805 = vsyncpa [#allocation3], 1 }
 0x381   :  { %807 = vsyncpa [#allocation3 + $0x1], 1 }

</bundles_post_ra>
